<compile_context>
chip_gen: v7x
topology: tpu7x:2x2x1
jax: 0.10.0
libtpu: 0.0.40
codegen_flags: <defaults>
</compile_context>

<pallas_src>
import math

import jax
import jax.numpy as jnp
from jax.experimental import pallas as pl
from jax.experimental.pallas import tpu as pltpu


def _bdropout_kernel(scale_ref, x_ref, o_ref):
    # scale_ref: (M, N) shared mask (VMEM-resident across the grid) or
    #            (TL, M, N) per-element mask.  Numpy broadcasting handles both.
    o_ref[...] = x_ref[...] * scale_ref[...]


def bdropout_forward(x, seed, rate=0.5, shared_mask=True, block_bytes=2 << 20):
    """BDropout.forward.

    shared_mask=True  -> first-call path: one (M, N) Bernoulli mask shared
                         across all leading dims (the module's self.noise).
    shared_mask=False -> resample=True path: independent mask for every
                         element of x.
    """
    p = float(1.0 - rate)
    # TODO(synk): rate == 1.0 gives p == 0 -> inf/NaN scale, matching the
    # reference module's x * 0 / 0 behaviour; guard upstream if undesired.
    inv_p = 1.0 / p

    orig_shape = x.shape
    M, N = orig_shape[-2], orig_shape[-1]
    L = int(math.prod(orig_shape[:-2]))              # 1 if x is already 2-D
    xf = x.reshape(L, M, N)                          # glue: layout plumbing only

    # Bernoulli(p) mask -> fused scale = inv_p where kept, 0 where dropped,
    # pre-cast to x.dtype so the kernel multiply runs in the native dtype.
    key = jax.random.PRNGKey(seed)
    mask_shape = (M, N) if shared_mask else (L, M, N)
    keep = jax.random.bernoulli(key, p, mask_shape)
    scale = jnp.where(keep,
                      jnp.asarray(inv_p, x.dtype),
                      jnp.asarray(0, x.dtype))

    # Block ~block_bytes of x per grid step (memory-bound elementwise kernel;
    # tiny blocks are dominated by the ~0.35 us per-step pipeline overhead).
    itemsize = jnp.dtype(x.dtype).itemsize
    tl = max(1, block_bytes // (M * N * itemsize))
    tl = min(tl, L)
    grid = (pl.cdiv(L, tl),)

    if shared_mask:
        scale_spec = pl.BlockSpec((M, N), lambda l: (0, 0))        # VMEM-resident
    else:
        scale_spec = pl.BlockSpec((tl, M, N), lambda l: (l, 0, 0))

    out = pl.pallas_call(
        _bdropout_kernel,
        out_shape=jax.ShapeDtypeStruct((L, M, N), x.dtype),
        grid=grid,
        in_specs=[scale_spec,
                  pl.BlockSpec((tl, M, N), lambda l: (l, 0, 0))],
        out_specs=pl.BlockSpec((tl, M, N), lambda l: (l, 0, 0)),
        compiler_params=pltpu.CompilerParams(
            dimension_semantics=("parallel",)),      # stateless -> megacore-safe
    )(scale, xf)

    return out.reshape(orig_shape)


if __name__ == "__main__":
    rate = 0.5
    p = 1.0 - rate

    key = jax.random.PRNGKey(0)
    # batch=2, channels=4, mask_dims=2 -> mask shape (16, 128), shared across
    # the 2*4 leading slices (the module's first-forward-call path).
    x = jax.random.normal(key, (2, 4, 16, 128), dtype=jnp.float32)

    out = bdropout_forward(x, seed=1234, rate=rate, shared_mask=True)
    out = jax.block_until_ready(out)

    # sanity: every element is either 0 (dropped) or x / p (kept) ...
    ratio = out / jnp.where(x == 0, 1.0, x)
    is_dropped = jnp.abs(ratio) < 1e-5
    is_kept = jnp.abs(ratio - 1.0 / p) < 1e-4
    assert bool(jnp.all(jnp.logical_or(is_dropped, is_kept)))
    # ... the mask is identical across all leading slices ...
    kept = is_kept.reshape(-1, 16, 128)
    assert bool(jnp.all(kept == kept[0]))
    # ... and the output matches the pure-JAX reference exactly.
    ref_keep = jax.random.bernoulli(jax.random.PRNGKey(1234), p, (16, 128))
    ref = x * jnp.where(ref_keep, 1.0 / p, 0.0).astype(x.dtype)
    assert bool(jnp.allclose(out, ref))

    # also exercise the resample=True (independent-mask) path
    out2 = jax.block_until_ready(
        bdropout_forward(x, seed=99, rate=rate, shared_mask=False))
    ratio2 = out2 / jnp.where(x == 0, 1.0, x)
    ok2 = jnp.logical_or(jnp.abs(ratio2) < 1e-5,
                         jnp.abs(ratio2 - 1.0 / p) < 1e-4)
    assert bool(jnp.all(ok2))

    print("KERNEL_OK")
</pallas_src>

<mosaic_0001>
module attributes {stable_mosaic.version = 11 : i64} {
  func.func @_bdropout_kernel(%arg0: i32, %arg1: memref<16x128xf32, #tpu.memory_space<vmem>>, %arg2: memref<8x16x128xf32, #tpu.memory_space<vmem>>, %arg3: memref<8x16x128xf32, #tpu.memory_space<vmem>>) attributes {dimension_semantics = [#tpu.dimension_semantics<parallel>], iteration_bounds = array<i64: 1>, scalar_prefetch = 0 : i64, scratch_operands = 0 : i64, tpu.core_type = #tpu.core_type<tc>, window_params = [{pipeline_mode = #tpu.pipeline_mode<synchronous>, transform_indices = @transform_0, window_bounds = array<i64: 16, 128>}, {transform_indices = @transform_1, window_bounds = array<i64: 8, 16, 128>}, {transform_indices = @transform_2, window_bounds = array<i64: 8, 16, 128>}]} {
    %c0 = arith.constant 0 : index
    %c0_0 = arith.constant 0 : index
    %c0_1 = arith.constant 0 : index
    %0 = vector.load %arg2[%c0, %c0_0, %c0_1] : memref<8x16x128xf32, #tpu.memory_space<vmem>>, vector<8x16x128xf32>
    %c0_2 = arith.constant 0 : index
    %c0_3 = arith.constant 0 : index
    %1 = vector.load %arg1[%c0_2, %c0_3] : memref<16x128xf32, #tpu.memory_space<vmem>>, vector<16x128xf32>
    %2 = vector.shape_cast %1 : vector<16x128xf32> to vector<1x16x128xf32>
    %3 = vector.broadcast %2 : vector<1x16x128xf32> to vector<8x16x128xf32>
    %4 = arith.mulf %0, %3 : vector<8x16x128xf32>
    %c0_4 = arith.constant 0 : index
    %c0_5 = arith.constant 0 : index
    %c0_6 = arith.constant 0 : index
    %5 = vector.load %arg3[%c0_4, %c0_5, %c0_6] : memref<8x16x128xf32, #tpu.memory_space<vmem>>, vector<8x16x128xf32>
    tpu.vector_store %arg3[%c0_4, %c0_5, %c0_6], %4 {strides = array<i32>} : memref<8x16x128xf32, #tpu.memory_space<vmem>>, vector<8x16x128xf32>,
    return
  }
  func.func @transform_0(%arg0: i32) -> (i32, i32) {
    %c0_i32 = arith.constant 0 : i32
    %c0_i32_0 = arith.constant 0 : i32
    %c0_i32_1 = arith.constant 0 : i32
    return %c0_i32, %c0_i32_0 : i32, i32
  }
  func.func @transform_1(%arg0: i32) -> (i32, i32, i32) {
    %c0_i32 = arith.constant 0 : i32
    %c0_i32_0 = arith.constant 0 : i32
    %c0_i32_1 = arith.constant 0 : i32
    return %arg0, %c0_i32, %c0_i32_0 : i32, i32, i32
  }
  func.func @transform_2(%arg0: i32) -> (i32, i32, i32) {
    %c0_i32 = arith.constant 0 : i32
    %c0_i32_0 = arith.constant 0 : i32
    %c0_i32_1 = arith.constant 0 : i32
    return %arg0, %c0_i32, %c0_i32_0 : i32, i32, i32
  }
}

</mosaic_0001>

<bundles_post_ra>
// kernel: tpu_custom_call.1
= control target key start
LH: loop header
LB: loop body
LE: loop exit
PB: predicated region body
PF: predicated region fallthrough
CT: control target
= control target key end

     0   :  { %7 = vsyncpa [#allocation3], 0  ;;  %s250_s0 = inlined_call_operand.hbm [shape: f32[16,128], index: 0, kind: input, shape index: {}]   ;;  %s251_s1 = inlined_call_operand.hbm [shape: f32[8,16,128], index: 1, kind: input, shape index: {}]   ;;  %s252_s2 = inlined_call_operand.hbm [shape: f32[8,16,128], index: 2, kind: output, shape index: {}]  }
   0x1   :  { %8 = vsyncpa [#allocation6], 0 }
   0x2   :  { %9 = vsyncpa [#allocation4], 0  ;;  %s185_s9 = smov [#allocation2]   ;;  %s113_s13 = scalar_lea.hbm %s250_s0, 256 }
   0x3   :  { %s15_s10 = sshll.u32 %s185_s9, 4  ;;  %p114_p0 = scmp.ne.s32.totalorder %s250_s0, %s113_s13  ;;  %s16_s10 = int_to_ptr.vmem [resolvable:$true] %s15_s10 }
   0x4   :  { %p117_p1 = scmp.lt.u32.totalorder %s113_s13, %s250_s0 }
   0x6   :  { %p119_p2 = pnand %p117_p1, %p114_p0 }
   0x8   :  { %122 = shalt.err (!%p119_p2)
}
   0x9   :  { %s123_s18 = scalar_lea.vmem %s16_s10, 256  ;;  %p128_p4 = scmp.lt.s32.totalorder %s16_s10, %s16_s10 }
   0xa   :  { %p124_p3 = scmp.ne.s32.totalorder %s16_s10, %s123_s18  ;;  %p129_p5 = scmp.lt.s32.totalorder %s123_s18, %s123_s18 }
   0xc   :  { %p130_p6 = por %p129_p5, %p128_p4 }
   0xe   :  { %p131_p7 = pnand %p130_p6, %p124_p3 }
  0x10   :  { %134 = shalt.err (!%p131_p7)
}
  0x11   :  { %s186_s19 = smov 128   ;;  %s187_s20 = smov 8  }
  0x12   :  { %21 = dma.hbm_to_vmem [thread:$0]  %s250_s0, 256, %s16_s10, [#allocation3], %s186_s19, %s186_s19, %s187_s20  }
  0x13   :  { %s188_s23 = smov [#allocation5]   ;;  %s135_s27 = scalar_lea.hbm %s251_s1, 2048 }
  0x14   :  { %s27_s24 = sshll.u32 %s188_s23, 4  ;;  %p136_p8 = scmp.ne.s32.totalorder %s251_s1, %s135_s27  ;;  %s28_s24 = int_to_ptr.vmem [resolvable:$true] %s27_s24 }
  0x15   :  { %p139_p9 = scmp.lt.u32.totalorder %s135_s27, %s251_s1 }
  0x17   :  { %p141_p10 = pnand %p139_p9, %p136_p8 }
  0x19   :  { %144 = shalt.err (!%p141_p10)
}
  0x1a   :  { %s145_s4 = scalar_lea.vmem %s28_s24, 2048  ;;  %p150_p12 = scmp.lt.s32.totalorder %s28_s24, %s28_s24 }
  0x1b   :  { %p146_p11 = scmp.ne.s32.totalorder %s28_s24, %s145_s4  ;;  %p151_p13 = scmp.lt.s32.totalorder %s145_s4, %s145_s4 }
  0x1d   :  { %p152_p0 = por %p151_p13, %p150_p12 }
  0x1f   :  { %p153_p1 = pnand %p152_p0, %p146_p11 }
  0x21   :  { %156 = shalt.err (!%p153_p1)
}
  0x22   :  { %33 = dma.hbm_to_vmem [thread:$0]  %s251_s1, 2048, %s28_s24, [#allocation6], %s186_s19, %s186_s19, %s187_s20  }
  0x23   :  { %179 = dma.done.wait [#allocation3], 256  }
  0x24   :  { %180 = vsyncadd [#allocation3], 4294967040 }
  0x25   :  { %181 = dma.done.wait [#allocation6], 2048  }
  0x26   :  { %182 = vsyncadd [#allocation6], 4294965248  ;;  %v40_v0 = vld [vmem:[#allocation5] sm:$0xff]  ;;  %v56_v1 = vld [vmem:[#allocation2] sm:$0xff]  ;;  %s189_s1 = smov [#allocation7]  }
  0x27   :  { %v41_v2 = vld [vmem:[#allocation5 + $0x8] sm:$0xff]  ;;  %v58_v3 = vmul.f32 %v56_v1, %v40_v0  ;;  %v57_v4 = vld [vmem:[#allocation2 + $0x8] sm:$0xff]  ;;  %v42_v5 = vld [vmem:[#allocation5 + $0x10] sm:$0xff]  ;;  %s95_s6 = sshll.u32 %s189_s1, 4  ;;  %s96_s6 = int_to_ptr.vmem [resolvable:$true] %s95_s6 }
  0x28   :  { %v43_v6 = vld [vmem:[#allocation5 + $0x18] sm:$0xff]  ;;  %v59_v7 = vmul.f32 %v57_v4, %v41_v2  ;;  %v60_v8 = vmul.f32 %v56_v1, %v42_v5  ;;  %v44_v10 = vld [vmem:[#allocation5 + $0x20] sm:$0xff]  ;;  %v45_v11 = vld [vmem:[#allocation5 + $0x28] sm:$0xff]  ;;  %s157_s7 = scalar_lea.vmem %s96_s6, 2048  ;;  %p162_p3 = scmp.lt.s32.totalorder %s96_s6, %s96_s6 }
  0x29   :  { %v61_v9 = vmul.f32 %v57_v4, %v43_v6  ;;  %v46_v12 = vld [vmem:[#allocation5 + $0x30] sm:$0xff]  ;;  %74 = vst [vmem:[#allocation7] sm:$0xff] %v58_v3  ;;  %v62_v13 = vmul.f32 %v56_v1, %v44_v10  ;;  %v63_v14 = vmul.f32 %v57_v4, %v45_v11  ;;  %v47_v16 = vld [vmem:[#allocation5 + $0x38] sm:$0xff]  ;;  %v48_v17 = vld [vmem:[#allocation5 + $0x40] sm:$0xff]  ;;  %p158_p2 = scmp.ne.s32.totalorder %s96_s6, %s157_s7  ;;  %p163_p4 = scmp.lt.s32.totalorder %s157_s7, %s157_s7 }
  0x2a   :  { %v64_v15 = vmul.f32 %v56_v1, %v46_v12  ;;  %v49_v18 = vld [vmem:[#allocation5 + $0x48] sm:$0xff]  ;;  %75 = vst [vmem:[#allocation7 + $0x8] sm:$0xff] %v59_v7  ;;  %76 = vst [vmem:[#allocation7 + $0x10] sm:$0xff] %v60_v8  ;;  %v65_v19 = vmul.f32 %v57_v4, %v47_v16  ;;  %v66_v20 = vmul.f32 %v56_v1, %v48_v17  ;;  %v50_v22 = vld [vmem:[#allocation5 + $0x50] sm:$0xff] }
  0x2b   :  { %77 = vst [vmem:[#allocation7 + $0x18] sm:$0xff] %v61_v9  ;;  %v67_v21 = vmul.f32 %v57_v4, %v49_v18  ;;  %v51_v23 = vld [vmem:[#allocation5 + $0x58] sm:$0xff]  ;;  %v52_v24 = vld [vmem:[#allocation5 + $0x60] sm:$0xff]  ;;  %78 = vst [vmem:[#allocation7 + $0x20] sm:$0xff] %v62_v13  ;;  %v68_v25 = vmul.f32 %v56_v1, %v50_v22  ;;  %p164_p5 = por %p163_p4, %p162_p3 }
  0x2c   :  { %79 = vst [vmem:[#allocation7 + $0x28] sm:$0xff] %v63_v14  ;;  %80 = vst [vmem:[#allocation7 + $0x30] sm:$0xff] %v64_v15  ;;  %v69_v26 = vmul.f32 %v57_v4, %v51_v23  ;;  %v70_v27 = vmul.f32 %v56_v1, %v52_v24  ;;  %v53_v28 = vld [vmem:[#allocation5 + $0x68] sm:$0xff]  ;;  %v54_v29 = vld [vmem:[#allocation5 + $0x70] sm:$0xff] }
  0x2d   :  { %v55_v30 = vld [vmem:[#allocation5 + $0x78] sm:$0xff]  ;;  %81 = vst [vmem:[#allocation7 + $0x38] sm:$0xff] %v65_v19  ;;  %82 = vst [vmem:[#allocation7 + $0x40] sm:$0xff] %v66_v20  ;;  %v71_v31 = vmul.f32 %v57_v4, %v53_v28  ;;  %v72_v32 = vmul.f32 %v56_v1, %v54_v29  ;;  %p165_p6 = pnand %p164_p5, %p158_p2 }
  0x2e   :  { %83 = vst [vmem:[#allocation7 + $0x48] sm:$0xff] %v67_v21  ;;  %v73_v33 = vmul.f32 %v57_v4, %v55_v30  ;;  %84 = vst [vmem:[#allocation7 + $0x50] sm:$0xff] %v68_v25 }
  0x2f   :  { %85 = vst [vmem:[#allocation7 + $0x58] sm:$0xff] %v69_v26  ;;  %86 = vst [vmem:[#allocation7 + $0x60] sm:$0xff] %v70_v27 }
  0x30   :  { %87 = vst [vmem:[#allocation7 + $0x68] sm:$0xff] %v71_v31  ;;  %88 = vst [vmem:[#allocation7 + $0x70] sm:$0xff] %v72_v32 }
  0x31   :  { %89 = vst [vmem:[#allocation7 + $0x78] sm:$0xff] %v73_v33 }
  0x32   :  { %168 = shalt.err (!%p165_p6)
}
  0x33   :  { %s169_s10 = scalar_lea.hbm %s252_s2, 2048 }
  0x34   :  { %p170_p7 = scmp.ne.s32.totalorder %s252_s2, %s169_s10  ;;  %p173_p8 = scmp.lt.u32.totalorder %s169_s10, %s252_s2 }
  0x36   :  { %p175_p9 = pnand %p173_p8, %p170_p7 }
  0x38   :  { %178 = shalt.err (!%p175_p9)
}
  0x39   :  { %101 = dma.vmem_to_hbm [thread:$0]  %s96_s6, 2048, %s252_s2, [#allocation4], %s186_s19, %s186_s19, %s187_s20  }
  0x3a   :  { %183 = dma.done.wait [#allocation4], 2048  }
  0x3b   :  { %184 = vsyncadd [#allocation4], 4294965248 }
  0x3c   :  { %105 = vsyncpa [#allocation3], 1 }
  0x3d   :  { %106 = vsyncpa [#allocation6], 1 }
  0x3e   :  { %107 = vsyncpa [#allocation4], 1 }

</bundles_post_ra>
